<compile_context>
chip_gen: v7x
topology: tpu7x:2x2x1
jax: 0.10.0
libtpu: 0.0.40
codegen_flags: <defaults>
</compile_context>

<pallas_src>
from math import gcd

import jax
import jax.numpy as jnp
from jax.experimental import pallas as pl
from jax.experimental.pallas import tpu as pltpu


def _exact_onehot_dot(a_f32, onehot_f32):
    """f32 @ {0,1}-matrix product that stays exact even if the MXU truncates f32
    inputs to bf16: split the f32 operand into a bf16 'hi' part plus residual and
    accumulate both passes in f32."""
    a_hi = a_f32.astype(jnp.bfloat16).astype(jnp.float32)
    a_lo = a_f32 - a_hi
    return (jnp.dot(a_hi, onehot_f32, preferred_element_type=jnp.float32)
            + jnp.dot(a_lo, onehot_f32, preferred_element_type=jnp.float32))


def _pick_block_rows(n, requested):
    """Largest row tile <= requested that divides n, preferring multiples of 16
    (bf16 sublane packing); falls back to the full extent."""
    requested = max(1, min(requested, n))
    for tm in range(requested, 0, -1):
        if n % tm == 0 and (tm % 16 == 0 or tm == n):
            return tm
    return n


def make_linear_gn_relu(n_in, n_out, ng=32, act=True, eps=1e-5, block_rows=256):
    G = gcd(ng, n_out)          # PyTorch: nn.GroupNorm(gcd(ng, n_out), n_out)
    gs = n_out // G             # channels per (contiguous) group

    def kernel(x_ref, w_ref, gamma_ref, beta_ref, gmat_ref, gmat_t_ref, o_ref):
        tm = x_ref.shape[0]

        # ---- linear: bf16 MXU inputs, f32 accumulator ----
        y = jnp.dot(x_ref[...], w_ref[...],
                    preferred_element_type=jnp.float32)            # (tm, n_out) f32

        gmat = gmat_ref[...]                                       # (n_out, G) one-hot
        gmat_t = gmat_t_ref[...]                                   # (G, n_out) one-hot

        # ---- group mean (exact one-hot reduction), broadcast back per channel ----
        mean_g = _exact_onehot_dot(y, gmat) * (1.0 / gs)           # (tm, G)
        mean_c = _exact_onehot_dot(mean_g, gmat_t)                 # (tm, n_out)
        d = y - mean_c                                             # centered activations

        # ---- two-pass (cancellation-free) biased variance, rsqrt per group ----
        var_g = _exact_onehot_dot(d * d, gmat) * (1.0 / gs)        # (tm, G)
        inv_g = jax.lax.rsqrt(var_g + eps)                         # EUP: gs x fewer rsqrts

        # ---- broadcast 1/std to channels, fold gamma, apply as one FMA ----
        scale_c = _exact_onehot_dot(inv_g, gmat_t) * gamma_ref[...]
        out = d * scale_c + beta_ref[...]
        if act:
            out = jnp.maximum(out, 0.0)
        o_ref[...] = out.astype(o_ref.dtype)

    def fwd(x, w_t, gamma, beta):
        """x: (N, n_in) f32; w_t: (n_in, n_out) f32 (nn.Linear weight, transposed)."""
        N = x.shape[0]
        tm = _pick_block_rows(N, block_rows)
        grid = (N // tm,)

        # host-side constants: one-hot group membership and its transpose
        gmat = ((jnp.arange(n_out)[:, None] // gs) ==
                jnp.arange(G)[None, :]).astype(jnp.float32)        # (n_out, G)
        gmat_t = gmat.T                                            # (G, n_out)
        gamma2 = gamma.reshape(1, n_out).astype(jnp.float32)
        beta2 = beta.reshape(1, n_out).astype(jnp.float32)

        # bf16 on the MXU / over the wire; GroupNorm math stays f32 in-kernel.
        x_lo = x.astype(jnp.bfloat16)
        w_lo = w_t.astype(jnp.bfloat16)

        cost = pl.CostEstimate(
            flops=int(2 * N * n_in * n_out            # main GEMM
                      + 16 * N * n_out * G            # one-hot stat/broadcast matmuls (hi+lo)
                      + 8 * N * n_out),               # elementwise
            transcendentals=int(N * G),
            bytes_accessed=int(N * n_in * 2 + n_in * n_out * 2 + N * n_out * 4
                               + 2 * n_out * 4 + 2 * n_out * G * 4),
        )

        return pl.pallas_call(
            kernel,
            grid=grid,
            in_specs=[
                pl.BlockSpec((tm, n_in), lambda i: (i, 0)),        # x: row-tiled, streamed
                pl.BlockSpec((n_in, n_out), lambda i: (0, 0)),     # W: resident in VMEM
                pl.BlockSpec((1, n_out), lambda i: (0, 0)),        # gamma
                pl.BlockSpec((1, n_out), lambda i: (0, 0)),        # beta
                pl.BlockSpec((n_out, G), lambda i: (0, 0)),        # group one-hot
                pl.BlockSpec((G, n_out), lambda i: (0, 0)),        # its transpose (host-side)
            ],
            out_specs=pl.BlockSpec((tm, n_out), lambda i: (i, 0)), # lane-dense output tile
            out_shape=jax.ShapeDtypeStruct((N, n_out), jnp.float32),
            compiler_params=pltpu.CompilerParams(
                dimension_semantics=("parallel",),                 # shard row tiles across TCs
                vmem_limit_bytes=32 * 1024 * 1024,                 # re-derive per generation
            ),
            cost_estimate=cost,
        )(x_lo, w_lo, gamma2, beta2, gmat, gmat_t)

    return fwd


def reference(x, w_t, gamma, beta, n_out, ng, act=True, eps=1e-5):
    """PyTorch-faithful forward (f32 GroupNorm, two-pass biased variance).  The matmul
    uses the same bf16 MXU inputs as the kernel so the check isolates the hand-rolled
    GroupNorm / affine / ReLU path."""
    G = gcd(ng, n_out)
    gs = n_out // G
    y = jnp.dot(x.astype(jnp.bfloat16), w_t.astype(jnp.bfloat16),
                preferred_element_type=jnp.float32)
    yg = y.reshape(x.shape[0], G, gs)
    mean = yg.mean(-1, keepdims=True)
    var = ((yg - mean) ** 2).mean(-1, keepdims=True)
    out = ((yg - mean) / jnp.sqrt(var + eps)).reshape(x.shape[0], n_out)
    out = out * gamma[None, :] + beta[None, :]
    if act:
        out = jnp.maximum(out, 0.0)
    return out


if __name__ == "__main__":
    # Small shapes consistent with the module: x is (N, n_in); n_out a multiple of 128
    # for lane-dense stores; ng=32 (module default) -> G = gcd(32, 128) = 32, gs = 4.
    N, n_in, n_out, ng = 64, 64, 128, 32

    key = jax.random.PRNGKey(0)
    kx, kw, kg, kb = jax.random.split(key, 4)
    x = jax.random.normal(kx, (N, n_in), dtype=jnp.float32)
    # nn.Linear weight is (n_out, n_in); the kernel consumes it transposed.
    w = jax.random.normal(kw, (n_out, n_in), dtype=jnp.float32) * (1.0 / n_in ** 0.5)
    w_t = w.T
    gamma = 1.0 + 0.1 * jax.random.normal(kg, (n_out,), dtype=jnp.float32)
    beta = 0.1 * jax.random.normal(kb, (n_out,), dtype=jnp.float32)

    # block_rows=32 -> grid=(2,): exercises the pipelined / parallel row tiling.
    fwd = make_linear_gn_relu(n_in, n_out, ng=ng, act=True, block_rows=32)
    out = jax.block_until_ready(fwd(x, w_t, gamma, beta))

    ref = reference(x, w_t, gamma, beta, n_out=n_out, ng=ng, act=True)
    max_err = float(jnp.max(jnp.abs(out - ref)))
    if not jnp.allclose(out, ref, atol=2e-3, rtol=2e-3):
        raise AssertionError(
            f"Pallas output mismatch vs reference (max abs err {max_err:.3e})")
    print("KERNEL_OK")
</pallas_src>

<mosaic_0001>
module attributes {stable_mosaic.version = 11 : i64} {
  func.func @kernel(%arg0: i32, %arg1: memref<32x64xbf16, #tpu.memory_space<vmem>>, %arg2: memref<64x128xbf16, #tpu.memory_space<vmem>>, %arg3: memref<1x128xf32, #tpu.memory_space<vmem>>, %arg4: memref<1x128xf32, #tpu.memory_space<vmem>>, %arg5: memref<128x32xf32, #tpu.memory_space<vmem>>, %arg6: memref<32x128xf32, #tpu.memory_space<vmem>>, %arg7: memref<32x128xf32, #tpu.memory_space<vmem>>) attributes {dimension_semantics = [#tpu.dimension_semantics<parallel>], iteration_bounds = array<i64: 2>, scalar_prefetch = 0 : i64, scratch_operands = 0 : i64, tpu.core_type = #tpu.core_type<tc>, window_params = [{transform_indices = @transform_0, window_bounds = array<i64: 32, 64>}, {pipeline_mode = #tpu.pipeline_mode<synchronous>, transform_indices = @transform_1, window_bounds = array<i64: 64, 128>}, {pipeline_mode = #tpu.pipeline_mode<synchronous>, transform_indices = @transform_2, window_bounds = array<i64: 1, 128>}, {pipeline_mode = #tpu.pipeline_mode<synchronous>, transform_indices = @transform_3, window_bounds = array<i64: 1, 128>}, {pipeline_mode = #tpu.pipeline_mode<synchronous>, transform_indices = @transform_4, window_bounds = array<i64: 128, 32>}, {pipeline_mode = #tpu.pipeline_mode<synchronous>, transform_indices = @transform_5, window_bounds = array<i64: 32, 128>}, {transform_indices = @transform_6, window_bounds = array<i64: 32, 128>}]} {
    %c0 = arith.constant 0 : index
    %c0_0 = arith.constant 0 : index
    %0 = vector.load %arg1[%c0, %c0_0] : memref<32x64xbf16, #tpu.memory_space<vmem>>, vector<32x64xbf16>
    %c0_1 = arith.constant 0 : index
    %c0_2 = arith.constant 0 : index
    %1 = vector.load %arg2[%c0_1, %c0_2] : memref<64x128xbf16, #tpu.memory_space<vmem>>, vector<64x128xbf16>
    %cst = arith.constant dense<0.000000e+00> : vector<32x128xf32>
    %2 = tpu.matmul %0, %1, %cst {dimension_numbers = #tpu.dot_dimension_numbers<[1], [0], [0], [1], [0, 0, 1, 1], [], []>} : vector<32x64xbf16>, vector<64x128xbf16>, vector<32x128xf32> -> vector<32x128xf32>
    %c0_3 = arith.constant 0 : index
    %c0_4 = arith.constant 0 : index
    %3 = vector.load %arg5[%c0_3, %c0_4] : memref<128x32xf32, #tpu.memory_space<vmem>>, vector<128x32xf32>
    %c0_5 = arith.constant 0 : index
    %c0_6 = arith.constant 0 : index
    %4 = vector.load %arg6[%c0_5, %c0_6] : memref<32x128xf32, #tpu.memory_space<vmem>>, vector<32x128xf32>
    %5 = arith.truncf %2 : vector<32x128xf32> to vector<32x128xbf16>
    %6 = arith.extf %5 : vector<32x128xbf16> to vector<32x128xf32>
    %7 = arith.subf %2, %6 : vector<32x128xf32>
    %cst_7 = arith.constant dense<0.000000e+00> : vector<32x32xf32>
    %8 = tpu.matmul %6, %3, %cst_7 {dimension_numbers = #tpu.dot_dimension_numbers<[1], [0], [0], [1], [0, 0, 1, 1], [], []>} : vector<32x128xf32>, vector<128x32xf32>, vector<32x32xf32> -> vector<32x32xf32>
    %cst_8 = arith.constant dense<0.000000e+00> : vector<32x32xf32>
    %9 = tpu.matmul %7, %3, %cst_8 {dimension_numbers = #tpu.dot_dimension_numbers<[1], [0], [0], [1], [0, 0, 1, 1], [], []>} : vector<32x128xf32>, vector<128x32xf32>, vector<32x32xf32> -> vector<32x32xf32>
    %10 = arith.addf %8, %9 : vector<32x32xf32>
    %cst_9 = arith.constant 2.500000e-01 : f32
    %11 = vector.broadcast %cst_9 : f32 to vector<32x32xf32>
    %12 = arith.mulf %10, %11 : vector<32x32xf32>
    %13 = arith.truncf %12 : vector<32x32xf32> to vector<32x32xbf16>
    %14 = arith.extf %13 : vector<32x32xbf16> to vector<32x32xf32>
    %15 = arith.subf %12, %14 : vector<32x32xf32>
    %cst_10 = arith.constant dense<0.000000e+00> : vector<32x128xf32>
    %16 = tpu.matmul %14, %4, %cst_10 {dimension_numbers = #tpu.dot_dimension_numbers<[1], [0], [0], [1], [0, 0, 1, 1], [], []>} : vector<32x32xf32>, vector<32x128xf32>, vector<32x128xf32> -> vector<32x128xf32>
    %cst_11 = arith.constant dense<0.000000e+00> : vector<32x128xf32>
    %17 = tpu.matmul %15, %4, %cst_11 {dimension_numbers = #tpu.dot_dimension_numbers<[1], [0], [0], [1], [0, 0, 1, 1], [], []>} : vector<32x32xf32>, vector<32x128xf32>, vector<32x128xf32> -> vector<32x128xf32>
    %18 = arith.addf %16, %17 : vector<32x128xf32>
    %19 = arith.subf %2, %18 : vector<32x128xf32>
    %20 = arith.mulf %19, %19 : vector<32x128xf32>
    %21 = arith.truncf %20 : vector<32x128xf32> to vector<32x128xbf16>
    %22 = arith.extf %21 : vector<32x128xbf16> to vector<32x128xf32>
    %23 = arith.subf %20, %22 : vector<32x128xf32>
    %cst_12 = arith.constant dense<0.000000e+00> : vector<32x32xf32>
    %24 = tpu.matmul %22, %3, %cst_12 {dimension_numbers = #tpu.dot_dimension_numbers<[1], [0], [0], [1], [0, 0, 1, 1], [], []>} : vector<32x128xf32>, vector<128x32xf32>, vector<32x32xf32> -> vector<32x32xf32>
    %cst_13 = arith.constant dense<0.000000e+00> : vector<32x32xf32>
    %25 = tpu.matmul %23, %3, %cst_13 {dimension_numbers = #tpu.dot_dimension_numbers<[1], [0], [0], [1], [0, 0, 1, 1], [], []>} : vector<32x128xf32>, vector<128x32xf32>, vector<32x32xf32> -> vector<32x32xf32>
    %26 = arith.addf %24, %25 : vector<32x32xf32>
    %cst_14 = arith.constant 2.500000e-01 : f32
    %27 = vector.broadcast %cst_14 : f32 to vector<32x32xf32>
    %28 = arith.mulf %26, %27 : vector<32x32xf32>
    %cst_15 = arith.constant 9.99999974E-6 : f32
    %29 = vector.broadcast %cst_15 : f32 to vector<32x32xf32>
    %30 = arith.addf %28, %29 : vector<32x32xf32>
    %31 = math.rsqrt %30 : vector<32x32xf32>
    %32 = arith.truncf %31 : vector<32x32xf32> to vector<32x32xbf16>
    %33 = arith.extf %32 : vector<32x32xbf16> to vector<32x32xf32>
    %34 = arith.subf %31, %33 : vector<32x32xf32>
    %cst_16 = arith.constant dense<0.000000e+00> : vector<32x128xf32>
    %35 = tpu.matmul %33, %4, %cst_16 {dimension_numbers = #tpu.dot_dimension_numbers<[1], [0], [0], [1], [0, 0, 1, 1], [], []>} : vector<32x32xf32>, vector<32x128xf32>, vector<32x128xf32> -> vector<32x128xf32>
    %cst_17 = arith.constant dense<0.000000e+00> : vector<32x128xf32>
    %36 = tpu.matmul %34, %4, %cst_17 {dimension_numbers = #tpu.dot_dimension_numbers<[1], [0], [0], [1], [0, 0, 1, 1], [], []>} : vector<32x32xf32>, vector<32x128xf32>, vector<32x128xf32> -> vector<32x128xf32>
    %37 = arith.addf %35, %36 : vector<32x128xf32>
    %c0_18 = arith.constant 0 : index
    %c0_19 = arith.constant 0 : index
    %38 = vector.load %arg3[%c0_18, %c0_19] : memref<1x128xf32, #tpu.memory_space<vmem>>, vector<1x128xf32>
    %39 = vector.broadcast %38 : vector<1x128xf32> to vector<32x128xf32>
    %40 = arith.mulf %37, %39 : vector<32x128xf32>
    %41 = arith.mulf %19, %40 : vector<32x128xf32>
    %c0_20 = arith.constant 0 : index
    %c0_21 = arith.constant 0 : index
    %42 = vector.load %arg4[%c0_20, %c0_21] : memref<1x128xf32, #tpu.memory_space<vmem>>, vector<1x128xf32>
    %43 = vector.broadcast %42 : vector<1x128xf32> to vector<32x128xf32>
    %44 = arith.addf %41, %43 : vector<32x128xf32>
    %cst_22 = arith.constant 0.000000e+00 : f32
    %45 = vector.broadcast %cst_22 : f32 to vector<32x128xf32>
    %46 = arith.maximumf %44, %45 : vector<32x128xf32>
    %c0_23 = arith.constant 0 : index
    %c0_24 = arith.constant 0 : index
    %47 = vector.load %arg7[%c0_23, %c0_24] : memref<32x128xf32, #tpu.memory_space<vmem>>, vector<32x128xf32>
    tpu.vector_store %arg7[%c0_23, %c0_24], %46 {strides = array<i32>} : memref<32x128xf32, #tpu.memory_space<vmem>>, vector<32x128xf32>,
    return
  }
  func.func @transform_0(%arg0: i32) -> (i32, i32) {
    %c0_i32 = arith.constant 0 : i32
    %c0_i32_0 = arith.constant 0 : i32
    return %arg0, %c0_i32 : i32, i32
  }
  func.func @transform_1(%arg0: i32) -> (i32, i32) {
    %c0_i32 = arith.constant 0 : i32
    %c0_i32_0 = arith.constant 0 : i32
    %c0_i32_1 = arith.constant 0 : i32
    return %c0_i32, %c0_i32_0 : i32, i32
  }
  func.func @transform_2(%arg0: i32) -> (i32, i32) {
    %c0_i32 = arith.constant 0 : i32
    %c0_i32_0 = arith.constant 0 : i32
    %c0_i32_1 = arith.constant 0 : i32
    return %c0_i32, %c0_i32_0 : i32, i32
  }
  func.func @transform_3(%arg0: i32) -> (i32, i32) {
    %c0_i32 = arith.constant 0 : i32
    %c0_i32_0 = arith.constant 0 : i32
    %c0_i32_1 = arith.constant 0 : i32
    return %c0_i32, %c0_i32_0 : i32, i32
  }
  func.func @transform_4(%arg0: i32) -> (i32, i32) {
    %c0_i32 = arith.constant 0 : i32
    %c0_i32_0 = arith.constant 0 : i32
    %c0_i32_1 = arith.constant 0 : i32
    return %c0_i32, %c0_i32_0 : i32, i32
  }
  func.func @transform_5(%arg0: i32) -> (i32, i32) {
    %c0_i32 = arith.constant 0 : i32
    %c0_i32_0 = arith.constant 0 : i32
    %c0_i32_1 = arith.constant 0 : i32
    return %c0_i32, %c0_i32_0 : i32, i32
  }
  func.func @transform_6(%arg0: i32) -> (i32, i32) {
    %c0_i32 = arith.constant 0 : i32
    %c0_i32_0 = arith.constant 0 : i32
    return %arg0, %c0_i32 : i32, i32
  }
}

</mosaic_0001>

<bundles_post_ra>
// kernel: tpu_custom_call.1
= control target key start
LH: loop header
LB: loop body
LE: loop exit
PB: predicated region body
PF: predicated region fallthrough
CT: control target
= control target key end

     0   :  { %11 = vsyncpa [#allocation3], 0  ;;  %s2331_s0 = inlined_call_operand.vmem [shape: bf16[64,64], index: 0, kind: input, shape index: {}]   ;;  %s2332_s1 = inlined_call_operand.vmem [shape: bf16[64,128], index: 1, kind: input, shape index: {}]   ;;  %s2333_s2 = inlined_call_operand.vmem [shape: f32[1,128], index: 2, kind: input, shape index: {}]   ;;  %s2334_s3 = inlined_call_operand.vmem [shape: f32[1,128], index: 3, kind: input, shape index: {}]   ;;  %s2335_s4 = inlined_call_operand.vmem [shape: f32[128,32], index: 4, kind: input, shape index: {}]   ;;  %s2336_s5 = inlined_call_operand.vmem [shape: f32[32,128], index: 5, kind: input, shape index: {}]   ;;  %s2337_s6 = inlined_call_operand.hbm [shape: f32[64,128], index: 6, kind: output, shape index: {}]  }
   0x1   :  { %13 = vsyncpa [#allocation3 + $0x1], 0  ;;  %s1989_s21 = smov 0   ;;  %s1991_s22 = smov 0  }
   0x2   :  { %s1993_s23 = smov 0   ;;  %s1995_s24 = smov 0  }
   0x3 LB: > { %s2010_s25 = sadd.s32 4294967295, %s1949_s24   ;;  %s1279_s26 = sadd.s32 4294967294, %s1949_s24   ;;  %s1949_s24 = sphi %s1995_s24, %s2343_s24   ;;  %s1945_s23 = sphi %s1993_s23, %s2342_s23   ;;  %s1941_s22 = sphi %s1991_s22, %s2341_s22   ;;  %s1937_s21 = sphi %s1989_s21, %s2340_s21  }
   0x4   : > { %s2014_s27 = sadd.s32 1, %s1949_s24   ;;  %s157_s28 = sadd.s32 1, %s1945_s23 }
   0x5   : > { %s154_s29 = ssub.s32 %s1949_s24, %s2014_s27  ;;  %p167_p0 = scmp.ne.s32.totalorder %s1945_s23, %s1941_s22 }
   0x6   : > { %p155_p1 = scmp.eq.s32.totalorder %s154_s29, 0  ;;  %p168_p2 = scmp.eq.s32.totalorder %s2010_s25, 1 }
   0x7   : > { %p173_p3 = scmp.ne.s32.totalorder %s1941_s22, %s1937_s21  ;;  %p174_p4 = scmp.eq.s32.totalorder %s1279_s26, 1 }
   0x8   : > { %s2025_s30 = scalar_select %p155_p1, %s1945_s23, %s157_s28  }
   0x9   : > { %p2027_p5 = por %p168_p2, %p167_p0  ;;  %p2031_p6 = por %p174_p4, %p173_p3 }
   0xa   : > { %p1282_p7 = scmp.ge.s32.totalorder %s1949_s24, 1  ;;  %p216_p8 = scmp.lt.s32.totalorder %s1949_s24, 3 }
   0xc   : > { %p217_p9 = pnand %p1282_p7, %p216_p8 }
   0xd   : > { %v1873_v0 = vld [vmem:[%s2332_s1] sm:$0xff] (!%p217_p9)   ;;  %s1284_s11 = sshll.u32 (!%p217_p9), %s2010_s25, 2  ;;  %v1874_v1 = vld [vmem:[%s2332_s1 + $0x8] sm:$0xff] (!%p217_p9)   ;;  %v1875_v2 = vld [vmem:[%s2332_s1 + $0x10] sm:$0xff] (!%p217_p9)   ;;  %vm300_vm0 = vcmask (!%p217_p9), 523264   ;;  %vm570_vm1 = vcmask (!%p217_p9), 261120  }
   0xe   : > { %220 = sbr.rel (%p217_p9) target bundleno = 1247 (0x4df), region = 44  ;;  %p247_p10 = scmp.lt.s32.totalorder (!%p217_p9), %s1284_s11, 7  ;;  %1436 = vmatprep.subr.bf16.mxu0 (!%p217_p9), %v1873_v0  ;;  %v356_v3 = vld [vmem:[%s2335_s4] sm:$0xff] (!%p217_p9)  ;;  %v357_v4 = vld [vmem:[%s2335_s4 + $0x8] sm:$0xff] (!%p217_p9)  ;;  %v358_v5 = vld [vmem:[%s2335_s4 + $0x10] sm:$0xff] (!%p217_p9) }
   0xf   : > { %1437 = vmatpush3.bf16.msra.mxu0 (!%p217_p9), %v1873_v0  ;;  %v2056_v6 = vpack.c.bf16 (!%p217_p9), %v357_v4, %v356_v3  ;;  %v359_v7 = vld [vmem:[%s2335_s4 + $0x18] sm:$0xff] (!%p217_p9)  ;;  %v360_v9 = vld [vmem:[%s2335_s4 + $0x20] sm:$0xff] (!%p217_p9)  ;;  %v361_v10 = vld [vmem:[%s2335_s4 + $0x28] sm:$0xff] (!%p217_p9)  ;;  %s243_s19 = sand.u32 (!%p217_p9), 1, %s1941_s22   ;;  %s1317_s10 = sshll.u32 (!%p217_p9), %s2010_s25, 9 }
  0x10   : > { %1438 = vmatprep.subr.bf16.mxu0 (!%p217_p9), %v1874_v1  ;;  %v2064_v8 = vpack.c.bf16 (!%p217_p9), %v359_v7, %v358_v5  ;;  %v1876_v12 = vld [vmem:[%s2332_s1 + $0x18] sm:$0xff] (!%p217_p9)   ;;  %v2079_v13 = vpack.c.bf16 (!%p217_p9), %v361_v10, %v360_v9  ;;  %v362_v14 = vld [vmem:[%s2335_s4 + $0x30] sm:$0xff] (!%p217_p9)  ;;  %v364_v18 = vld [vmem:[%s2335_s4 + $0x40] sm:$0xff] (!%p217_p9)  ;;  %s2284_s15 = scalar_lea.hbm (!%p217_p9), %s2337_s6, %s1317_s10  ;;  %s2290_s25 = scalar_lea.sflag (!%p217_p9), [#allocation3], %s243_s19 }
  0x11   : > { %1657 = vmatprep.subr.bf16.mxu1 (!%p217_p9), %v2056_v6  ;;  %v363_v15 = vld [vmem:[%s2335_s4 + $0x38] sm:$0xff] (!%p217_p9)  ;;  %v365_v19 = vld [vmem:[%s2335_s4 + $0x48] sm:$0xff] (!%p217_p9)  ;;  %v366_v21 = vld [vmem:[%s2335_s4 + $0x50] sm:$0xff] (!%p217_p9)  ;;  %s1951_s16 = smov (!%p217_p9), [#allocation2]  }
  0x12   : > { %1659 = vmatpush3.bf16.msra.mxu1 (!%p217_p9), %v2056_v6  ;;  %v2089_v16 = vpack.c.bf16 (!%p217_p9), %v363_v15, %v362_v14  ;;  %v2099_v20 = vpack.c.bf16 (!%p217_p9), %v365_v19, %v364_v18  ;;  %v367_v22 = vld [vmem:[%s2335_s4 + $0x58] sm:$0xff] (!%p217_p9)  ;;  %v368_v24 = vld [vmem:[%s2335_s4 + $0x60] sm:$0xff] (!%p217_p9)  ;;  %v369_v25 = vld [vmem:[%s2335_s4 + $0x68] sm:$0xff] (!%p217_p9)  ;;  %s1891_s17 = sshll.u32 (!%p217_p9), %s1951_s16, 4  ;;  %s1892_s17 = int_to_ptr.vmem [resolvable:$false] %s1891_s17 }
  0x13   : > { %1439 = vmatpush3.bf16.msra.mxu0 (!%p217_p9), %v1874_v1  ;;  %1661 = vmatprep.subr.bf16.mxu1 (!%p217_p9), %v2064_v8  ;;  %v2110_v23 = vpack.c.bf16 (!%p217_p9), %v367_v22, %v366_v21  ;;  %v2121_v26 = vpack.c.bf16 (!%p217_p9), %v369_v25, %v368_v24  ;;  %v370_v27 = vld [vmem:[%s2335_s4 + $0x70] sm:$0xff] (!%p217_p9)  ;;  %v371_v28 = vld [vmem:[%s2335_s4 + $0x78] sm:$0xff] (!%p217_p9)  ;;  %v372_v44 = vld [vmem:[%s2336_s5] sm:$0xff] (!%p217_p9) }
  0x14   : > { %1440 = vmatprep.subr.bf16.mxu0 (!%p217_p9), %v1875_v2  ;;  %v2131_v29 = vpack.c.bf16 (!%p217_p9), %v371_v28, %v370_v27  ;;  %v373_v45 = vld [vmem:[%s2336_s5 + $0x8] sm:$0xff] (!%p217_p9)  ;;  %v374_v47 = vld [vmem:[%s2336_s5 + $0x10] sm:$0xff] (!%p217_p9)  ;;  %v375_v48 = vld [vmem:[%s2336_s5 + $0x18] sm:$0xff] (!%p217_p9) }
  0x15   : > { %s2345_s11 = smov (!%p247_p10, %s1284_s11), 7  ;;  %v2173_v46 = vpack.c.bf16 %v373_v45, %v372_v44  ;;  %v2185_v49 = vpack.c.bf16 %v375_v48, %v374_v47 }
  0x16   : > { %s1285_s28 = sshll.u32 %s2345_s11, 2  ;;  %1663 = vmatpush3.bf16.msra.mxu1 %v2064_v8  ;;  %s1893_s11 = scalar_lea.vmem %s1892_s17, 1024 }
  0x17   : > { %s250_s13 = scalar_lea.vmem %s2331_s0, %s1285_s28  ;;  %1441 = vmatpush3.bf16.msra.mxu0 %v1875_v2  ;;  %1665 = vmatprep.subr.bf16.mxu1 %v2079_v13  ;;  %s1283_s28 = sshll.u32 %s243_s19, 5 }
  0x18   : > { %v1877_v11 = vld [vmem:[%s250_s13] sm:$0xff]   ;;  %1442 = vmatprep.subr.bf16.mxu0 %v1876_v12  ;;  %v1878_v17 = vld [vmem:[%s250_s13 + $0x8] sm:$0xff]   ;;  %s245_s29 = scalar_lea.vmem [#allocation2], %s1283_s28 }
  0x19   : > { %1444 = vmatprep.mubr.msk.bf16.mxu0 %vm300_vm0, %v1877_v11  ;;  %s1217_s9 = sshll.u32 %s245_s29, 4  ;;  %s2286_s9 = int_to_ptr.vmem [resolvable:$true] %s1217_s9 }
  0x1a   : > { %1667 = vmatpush3.bf16.msra.mxu1 %v2079_v13  ;;  %s1887_s13 = scalar_lea.vmem %s2286_s9, 512  ;;  %p1894_p0 = scmp.lt.s32.totalorder %s2286_s9, %s1892_s17 }
  0x1b   : > { %1443 = vmatpush3.bf16.msra.mxu0 %v1876_v12  ;;  %1669 = vmatprep.subr.bf16.mxu1 %v2089_v16  ;;  %p1888_p11 = scmp.ne.s32.totalorder %s2286_s9, %s1887_s13  ;;  %p1895_p1 = scmp.lt.s32.totalorder %s1893_s11, %s1887_s13 }
  0x1c   : > { %1729 = vmatprep.subr.bf16.mxu0 %v2173_v46 }
  0x1d   : > { %p1889_p12 = pnand %p1888_p11, %p2027_p5  ;;  %p1896_p2 = por %p1895_p1, %p1894_p0 }
  0x1e   : > { %1445 = vmatmul.mubr.msk.bf16.vlgmr.msra.gmra.mrb[0].mxu0 %vm300_vm0, %v1878_v17  ;;  %1671 = vmatpush3.bf16.msra.mxu1 %v2089_v16 }
  0x1f   : > { %1673 = vmatprep.subr.bf16.mxu1 %v2099_v20  ;;  %1731 = vmatpush3.bf16.msra.mxu0 %v2173_v46  ;;  %p1890_p13 = pneg %p1889_p12 }
  0x20   : > { %1733 = vmatprep.subr.bf16.mxu0 %v2185_v49 }
  0x21   : > { %p1897_p3 = pnand %p1896_p2, %p1890_p13 }
  0x22   : > { %1675 = vmatpush3.bf16.msra.mxu1 %v2099_v20 }
  0x23   : > { %1677 = vmatprep.subr.bf16.mxu1 %v2110_v23  ;;  %1735 = vmatpush3.bf16.msra.mxu0 %v2185_v49 }
  0x24   : > { %1737 = vmatprep.subr.bf16.mxu0 %v2056_v6 }
  0x26   : > { %1679 = vmatpush3.bf16.msra.mxu1 %v2110_v23 }
  0x27   : > { %1681 = vmatprep.subr.bf16.mxu1 %v2121_v26 }
  0x2a   : > { %1683 = vmatpush3.bf16.msra.mxu1 %v2121_v26 }
  0x2b   : > { %1685 = vmatprep.subr.bf16.mxu1 %v2131_v29 }
  0x2e   : > { %1687 = vmatpush3.bf16.msra.mxu1 %v2131_v29 }
  0x2f   : > { %1689 = vmatprep.subr.bf16.mxu1 %v2056_v6 }
  0xf1   : > { %v2136_v30 = vpop.f32.mrb[0].mxu0 }
  0xf2   : > { %v2138_v31 = vpop.f32.mrb[1].mxu0 }
  0xf3   : > { %v2140_v32 = vpop.f32.mrb[2].mxu0 }
  0xf4   : > { %v377_v33 = vpack.c.bf16 %v2140_v32, %v2136_v30  ;;  %v2144_v34 = vpop.f32.mrb[3].mxu0 }
  0xf5   : > { %v376_v35 = vpack.c.bf16 %v2144_v34, %v2138_v31 }
  0xf6   : > { %v380_v36 = vunpack.c.l.bf16 %v377_v33  ;;  %v381_v37 = vunpack.c.h.bf16 %v377_v33 }
  0xf7   : > { %v379_v38 = vunpack.c.h.bf16 %v376_v35  ;;  %v378_v39 = vunpack.c.l.bf16 %v376_v35 }
  0xf8   : > { %v385_v40 = vsub.f32 %v2140_v32, %v381_v37  ;;  %v384_v41 = vsub.f32 %v2136_v30, %v380_v36 }
  0xf9   : > { %v383_v42 = vsub.f32 %v2144_v34, %v379_v38  ;;  %v382_v43 = vsub.f32 %v2138_v31, %v378_v39 }
  0xfb   : > { %1480 = vmatprep.mubr.f32.mxu1 %v382_v43 }
  0xfc   : > { %1481 = vmatmul.mubr.f32.vlgmr.msra.gmra.mrb[0].mxu1 %v383_v42 }
  0xfd   : > { %1691 = vmatpush3.bf16.msra.mxu1 %v2056_v6  ;;  %1483 = vmatprep.mubr.f32.mxu1 %v384_v41 }
  0xfe   : > { %1693 = vmatprep.subr.bf16.mxu1 %v2064_v8 }
 0x100   : > { %1484 = vmatmul.mubr.f32.gmra.mrb[2].mxu1 %v385_v40 }
 0x101   : > { %1695 = vmatpush3.bf16.msra.mxu1 %v2064_v8  ;;  %1518 = vmatprep.mubr.f32.mxu1 %v378_v39 }
 0x102   : > { %1697 = vmatprep.subr.bf16.mxu1 %v2079_v13 }
 0x105   : > { %1699 = vmatpush3.bf16.msra.mxu1 %v2079_v13 }
 0x106   : > { %1701 = vmatprep.subr.bf16.mxu1 %v2089_v16 }
 0x109   : > { %1703 = vmatpush3.bf16.msra.mxu1 %v2089_v16 }
 0x10a   : > { %1705 = vmatprep.subr.bf16.mxu1 %v2099_v20 }
 0x10d   : > { %1707 = vmatpush3.bf16.msra.mxu1 %v2099_v20 }
 0x10e   : > { %1709 = vmatprep.subr.bf16.mxu1 %v2110_v23 }
 0x111   : > { %1711 = vmatpush3.bf16.msra.mxu1 %v2110_v23 }
 0x112   : > { %1713 = vmatprep.subr.bf16.mxu1 %v2121_v26 }
 0x115   : > { %1715 = vmatpush3.bf16.msra.mxu1 %v2121_v26 }
 0x116   : > { %1717 = vmatprep.subr.bf16.mxu1 %v2131_v29 }
 0x119   : > { %1719 = vmatpush3.bf16.msra.mxu1 %v2131_v29 }
 0x11a   : > { %1721 = vmatprep.subr.bf16.mxu1 %v2173_v46 }
 0x11c   : > { %1519 = vmatmul.mubr.f32.vlgmr.msra.gmra.mrb[0].mxu1 %v379_v38 }
 0x11d   : > { %1521 = vmatprep.mubr.f32.mxu1 %v380_v36  ;;  %1723 = vmatpush3.bf16.msra.mxu1 %v2173_v46 }
 0x11e   : > { %1725 = vmatprep.subr.bf16.mxu1 %v2185_v49 }
 0x120   : > { %1522 = vmatmul.mubr.f32.gmra.mrb[2].mxu1 %v381_v37 }
 0x121   : > { %1727 = vmatpush3.bf16.msra.mxu1 %v2185_v49 }
 0x122   : > { %1801 = vmatprep.subr.bf16.mxu1 %v2173_v46 }
 0x1ef   : > { %v1520_v50 = vpop.f32.mrb[0].mxu1 }
 0x1f0   : > { %v557_v51 = vmul.f32 0.25, %v1520_v50  ;;  %v537_v52 = vpop.f32.mrb[1].mxu1 }
 0x1f1   : > { %v556_v53 = vmul.f32 0.25, %v537_v52 }
 0x1f3   : > { %v560_v54 = vpack.c.bf16 %v557_v51, %v556_v53  ;;  %v1523_v55 = vpop.f32.mrb[2].mxu1 }
 0x1f4   : > { %v559_v56 = vmul.f32 0.25, %v1523_v55  ;;  %v547_v57 = vpop.f32.mrb[3].mxu1 }
 0x1f5   : > { %v562_v58 = vunpack.c.l.bf16 %v560_v54  ;;  %v563_v59 = vunpack.c.h.bf16 %v560_v54  ;;  %v558_v60 = vmul.f32 0.25, %v547_v57 }
 0x1f7   : > { %v566_v61 = vsub.f32 %v556_v53, %v562_v58  ;;  %v567_v62 = vsub.f32 %v557_v51, %v563_v59  ;;  %v561_v63 = vpack.c.bf16 %v559_v56, %v558_v60  ;;  %1546 = vmatprep.mubr.msk.f32.mxu0 %vm570_vm1, %v562_v58 }
 0x1f8   : > { %1547 = vmatmul.mubr.msk.f32.vlgmr.msra.gmra.mrb[4].mxu0 %vm570_vm1, %v563_v59 }
 0x1f9   : > { %v564_v0 = vunpack.c.l.bf16 %v561_v63  ;;  %v565_v1 = vunpack.c.h.bf16 %v561_v63  ;;  %1532 = vmatprep.mubr.msk.f32.mxu1 %vm570_vm1, %v566_v61  ;;  %1739 = vmatpush3.bf16.msra.mxu0 %v2056_v6 }
 0x1fa   : > { %1533 = vmatmul.mubr.msk.f32.vlgmr.msra.gmra.mrb[4].mxu1 %vm570_vm1, %v567_v62  ;;  %1741 = vmatprep.subr.bf16.mxu0 %v2064_v8 }
 0x1fb   : > { %v568_v2 = vsub.f32 %v558_v60, %v564_v0  ;;  %v569_v3 = vsub.f32 %v559_v56, %v565_v1  ;;  %1549 = vmatprep.mubr.msk.f32.mxu0 %vm570_vm1, %v564_v0  ;;  %1803 = vmatpush3.bf16.msra.mxu1 %v2173_v46 }
 0x1fc   : > { %1550 = vmatmul.mubr.msk.f32.gmra.mrb[6].mxu0 %vm570_vm1, %v565_v1  ;;  %1805 = vmatprep.subr.bf16.mxu1 %v2185_v49 }
 0x1fd   : > { %1535 = vmatprep.mubr.msk.f32.mxu1 %vm570_vm1, %v568_v2  ;;  %1743 = vmatpush3.bf16.msra.mxu0 %v2064_v8 }
 0x1fe   : > { %1536 = vmatmul.mubr.msk.f32.gmra.mrb[6].mxu1 %vm570_vm1, %v569_v3  ;;  %1745 = vmatprep.subr.bf16.mxu0 %v2079_v13 }
 0x1ff   : > { %1807 = vmatpush3.bf16.msra.mxu1 %v2185_v49 }
 0x200   : > { %1809 = vmatprep.subr.bf16.mxu1 %v2173_v46 }
 0x201   : > { %1747 = vmatpush3.bf16.msra.mxu0 %v2079_v13 }
 0x202   : > { %1749 = vmatprep.subr.bf16.mxu0 %v2089_v16 }
 0x205   : > { %1751 = vmatpush3.bf16.msra.mxu0 %v2089_v16 }
 0x206   : > { %1753 = vmatprep.subr.bf16.mxu0 %v2099_v20 }
 0x209   : > { %1755 = vmatpush3.bf16.msra.mxu0 %v2099_v20 }
 0x20a   : > { %1757 = vmatprep.subr.bf16.mxu0 %v2110_v23 }
 0x20d   : > { %1759 = vmatpush3.bf16.msra.mxu0 %v2110_v23 }
 0x20e   : > { %1761 = vmatprep.subr.bf16.mxu0 %v2121_v26 }
 0x211   : > { %1763 = vmatpush3.bf16.msra.mxu0 %v2121_v26 }
 0x212   : > { %1765 = vmatprep.subr.bf16.mxu0 %v2131_v29 }
 0x215   : > { %1767 = vmatpush3.bf16.msra.mxu0 %v2131_v29 }
 0x216   : > { %1769 = vmatprep.subr.bf16.mxu0 %v2056_v6 }
 0x2cb   : > { %v1548_v4 = vpop.f32.mrb[4].mxu0 }
 0x2cc   : > { %v746_v5 = vpop.f32.mrb[5].mxu0 }
 0x2cd   : > { %v1534_v7 = vpop.f32.mrb[4].mxu1 }
 0x2ce   : > { %v752_v9 = vadd.f32 %v1548_v4, %v1534_v7  ;;  %v649_v10 = vpop.f32.mrb[5].mxu1 }
 0x2cf   : > { %v747_v11 = vadd.f32 %v746_v5, %v649_v10  ;;  %v1551_v12 = vpop.f32.mrb[6].mxu0 }
 0x2d0   : > { %v2222_v14 = vsub.f32 %v2144_v34, %v752_v9  ;;  %v756_v15 = vpop.f32.mrb[7].mxu0 }
 0x2d1   : > { %v2225_v17 = vsub.f32 %v2138_v31, %v747_v11  ;;  %v1537_v18 = vpop.f32.mrb[6].mxu1 }
 0x2d2   : > { %v770_v19 = vmul.f32 %v2222_v14, %v2222_v14  ;;  %v762_v21 = vadd.f32 %v1551_v12, %v1537_v18  ;;  %v659_v22 = vpop.f32.mrb[7].mxu1 }
 0x2d3   : > { %v769_v24 = vmul.f32 %v2225_v17, %v2225_v17  ;;  %v757_v25 = vadd.f32 %v756_v15, %v659_v22 }
 0x2d4   : > { %v2232_v27 = vsub.f32 %v2140_v32, %v762_v21 }
 0x2d5   : > { %v773_v28 = vpack.c.bf16 %v770_v19, %v769_v24  ;;  %v2235_v33 = vsub.f32 %v2136_v30, %v757_v25 }
 0x2d6   : > { %v772_v31 = vmul.f32 %v2232_v27, %v2232_v27 }
 0x2d7   : > { %v776_v34 = vunpack.c.h.bf16 %v773_v28  ;;  %v771_v35 = vmul.f32 %v2235_v33, %v2235_v33  ;;  %v775_v36 = vunpack.c.l.bf16 %v773_v28 }
 0x2d9   : > { %v780_v37 = vsub.f32 %v770_v19, %v776_v34  ;;  %v774_v38 = vpack.c.bf16 %v772_v31, %v771_v35  ;;  %v779_v39 = vsub.f32 %v769_v24, %v775_v36 }
 0x2db   : > { %1584 = vmatprep.mubr.f32.mxu0 %v779_v39  ;;  %v777_v40 = vunpack.c.l.bf16 %v774_v38  ;;  %v778_v41 = vunpack.c.h.bf16 %v774_v38 }
 0x2dc   : > { %1585 = vmatmul.mubr.f32.vlgmr.msra.gmra.mrb[8].mxu0 %v780_v37 }
 0x2dd   : > { %1771 = vmatpush3.bf16.msra.mxu0 %v2056_v6  ;;  %v781_v32 = vsub.f32 %v771_v35, %v777_v40  ;;  %v782_v30 = vsub.f32 %v772_v31, %v778_v41 }
 0x2de   : > { %1773 = vmatprep.subr.bf16.mxu0 %v2064_v8 }
 0x2df   : > { %1587 = vmatprep.mubr.f32.mxu0 %v781_v32 }
 0x2e0   : > { %1588 = vmatmul.mubr.f32.gmra.mrb[10].mxu0 %v782_v30 }
 0x2e1   : > { %1775 = vmatpush3.bf16.msra.mxu0 %v2064_v8  ;;  %1622 = vmatprep.mubr.f32.mxu0 %v775_v36 }
 0x2e2   : > { %1777 = vmatprep.subr.bf16.mxu0 %v2079_v13 }
 0x2e5   : > { %1779 = vmatpush3.bf16.msra.mxu0 %v2079_v13 }
 0x2e6   : > { %1781 = vmatprep.subr.bf16.mxu0 %v2089_v16 }
 0x2e9   : > { %1783 = vmatpush3.bf16.msra.mxu0 %v2089_v16 }
 0x2ea   : > { %1785 = vmatprep.subr.bf16.mxu0 %v2099_v20 }
 0x2ed   : > { %1787 = vmatpush3.bf16.msra.mxu0 %v2099_v20 }
 0x2ee   : > { %1789 = vmatprep.subr.bf16.mxu0 %v2110_v23 }
 0x2f1   : > { %1791 = vmatpush3.bf16.msra.mxu0 %v2110_v23 }
 0x2f2   : > { %1793 = vmatprep.subr.bf16.mxu0 %v2121_v26 }
 0x2f5   : > { %1795 = vmatpush3.bf16.msra.mxu0 %v2121_v26 }
 0x2f6   : > { %1797 = vmatprep.subr.bf16.mxu0 %v2131_v29 }
 0x2f9   : > { %1799 = vmatpush3.bf16.msra.mxu0 %v2131_v29 }
 0x2fc   : > { %1623 = vmatmul.mubr.f32.vlgmr.msra.gmra.mrb[8].mxu0 %v776_v34 }
 0x2fd   : > { %1625 = vmatprep.mubr.f32.mxu0 %v777_v40 }
 0x300   : > { %1626 = vmatmul.mubr.f32.gmra.mrb[10].mxu0 %v778_v41 }
 0x3cf   : > { %v1624_v6 = vpop.f32.mrb[8].mxu0 }
 0x3d0   : > { %v954_v8 = vmul.f32 0.25, %v1624_v6  ;;  %v934_v13 = vpop.f32.mrb[9].mxu0 }
 0x3d1   : > { %v953_v16 = vmul.f32 0.25, %v934_v13 }
 0x3d2   : > { %v958_v20 = vadd.f32 1e-05, %v954_v8 }
 0x3d3   : > { %v957_v42 = vadd.f32 1e-05, %v953_v16  ;;  %v1627_v43 = vpop.f32.mrb[10].mxu0 }
 0x3d4   : > { %1879 = vrsqrt.f32 %v958_v20  ;;  %v956_v23 = vmul.f32 0.25, %v1627_v43  ;;  %v944_v44 = vpop.f32.mrb[11].mxu0 }
 0x3d5   : > { %1881 = vrsqrt.f32 %v957_v42  ;;  %v955_v45 = vmul.f32 0.25, %v944_v44 }
 0x3d6   : > { %v960_v26 = vadd.f32 1e-05, %v956_v23 }
 0x3d7   : > { %v959_v47 = vadd.f32 1e-05, %v955_v45 }
 0x3d8   : > { %1883 = vrsqrt.f32 %v960_v26 }
 0x3d9   : > { %1885 = vrsqrt.f32 %v959_v47 }
 0x3de   : > { %v1880_v29 = vpop.eup %1879 }
 0x3df   : > { %v1882_v48 = vpop.eup %1881 }
 0x3e0   : > { %v965_v50 = vpack.c.bf16 %v1880_v29, %v1882_v48 }
 0x3e2   : > { %v1884_v51 = vpop.eup %1883  ;;  %v967_v52 = vunpack.c.l.bf16 %v965_v50  ;;  %v968_v53 = vunpack.c.h.bf16 %v965_v50 }
 0x3e3   : > { %v1886_v54 = vpop.eup %1885 }
 0x3e4   : > { %v971_v55 = vsub.f32 %v1882_v48, %v967_v52  ;;  %v972_v56 = vsub.f32 %v1880_v29, %v968_v53  ;;  %v966_v57 = vpack.c.bf16 %v1884_v51, %v1886_v54 }
 0x3e6   : > { %1636 = vmatprep.mubr.msk.f32.mxu1 %vm570_vm1, %v971_v55  ;;  %v969_v58 = vunpack.c.l.bf16 %v966_v57  ;;  %v970_v59 = vunpack.c.h.bf16 %v966_v57 }
 0x3e7   : > { %1637 = vmatmul.mubr.msk.f32.vlgmr.msra.gmra.mrb[8].mxu1 %vm570_vm1, %v972_v56 }
 0x3e8   : > { %1811 = vmatpush3.bf16.msra.mxu1 %v2173_v46  ;;  %v973_v60 = vsub.f32 %v1886_v54, %v969_v58  ;;  %v974_v61 = vsub.f32 %v1884_v51, %v970_v59  ;;  %v1310_v46 = vld [vmem:[%s2333_s2] ss:$0 sm:$0xff] }
 0x3e9   : > { %1813 = vmatprep.subr.bf16.mxu1 %v2185_v49 }
 0x3ea   : > { %1639 = vmatprep.mubr.msk.f32.mxu1 %vm570_vm1, %v973_v60 }
 0x3eb   : > { %1640 = vmatmul.mubr.msk.f32.gmra.mrb[10].mxu1 %vm570_vm1, %v974_v61 }
 0x3ec   : > { %1815 = vmatpush3.bf16.msra.mxu1 %v2185_v49  ;;  %1650 = vmatprep.mubr.msk.f32.mxu1 %vm570_vm1, %v967_v52  ;;  %v1311_v49 = vld [vmem:[%s2334_s3] ss:$0 sm:$0xff] }
 0x3ef   : > { %1651 = vmatmul.mubr.msk.f32.vlgmr.msra.gmra.mrb[8].mxu1 %vm570_vm1, %v968_v53 }
 0x3f0   : > { %1653 = vmatprep.mubr.msk.f32.mxu1 %vm570_vm1, %v969_v58 }
 0x3f3   : > { %1654 = vmatmul.mubr.msk.f32.gmra.mrb[10].mxu1 %vm570_vm1, %v970_v59 }
 0x4c2   : > { %v1652_v62 = vpop.f32.mrb[8].mxu1 }
 0x4c3   : > { %v1177_v63 = vmul.f32 %v1652_v62, %v1310_v46  ;;  %v1150_v0 = vpop.f32.mrb[9].mxu1 }
 0x4c4   : > { %v1176_v1 = vmul.f32 %v1310_v46, %v1150_v0 }
 0x4c5   : > { %v1181_v2 = vmul.f32 %v1177_v63, %v2222_v14 }
 0x4c6   : > { %v1180_v3 = vmul.f32 %v1176_v1, %v2225_v17  ;;  %v1655_v4 = vpop.f32.mrb[10].mxu1 }
 0x4c7   : > { %v1192_v5 = vadd.f32 %v1311_v49, %v1181_v2  ;;  %v1179_v7 = vmul.f32 %v1655_v4, %v1310_v46  ;;  %v1160_v9 = vpop.f32.mrb[11].mxu1 }
 0x4c8   : > { %v1191_v10 = vadd.f32 %v1311_v49, %v1180_v3  ;;  %v1178_v11 = vmul.f32 %v1310_v46, %v1160_v9 }
 0x4c9   : > { %v1196_v12 = vmax.f32 %v1192_v5, 0.0  ;;  %v1183_v15 = vmul.f32 %v1179_v7, %v2232_v27 }
 0x4ca   : > { %v1195_v18 = vmax.f32 %v1191_v10, 0.0  ;;  %v1182_v19 = vmul.f32 %v1178_v11, %v2235_v33 }
 0x4cb   : > { %1200 = vst [vmem:[%s245_s29 + $0x8] sm:$0xff] %v1196_v12  ;;  %v1194_v14 = vadd.f32 %v1311_v49, %v1183_v15 }
 0x4cc   : > { %1199 = vst [vmem:[%s245_s29] sm:$0xff] %v1195_v18  ;;  %v1193_v17 = vadd.f32 %v1311_v49, %v1182_v19 }
 0x4cd   : > { %v1198_v21 = vmax.f32 %v1194_v14, 0.0 }
 0x4ce   : > { %v1197_v22 = vmax.f32 %v1193_v17, 0.0 }
 0x4cf   : > { %1202 = vst [vmem:[%s245_s29 + $0x18] sm:$0xff] %v1198_v21 }
 0x4d0   : > { %1201 = vst [vmem:[%s245_s29 + $0x10] sm:$0xff] %v1197_v22 }
 0x4d1   : > { %1900 = shalt.err (!%p1897_p3)
}
 0x4d2   : > { %s1901_s18 = scalar_lea.hbm %s2284_s15, 512  ;;  %s1905_s26 = scalar_lea.hbm %s2337_s6, 1024 }
 0x4d3   : > { %p1902_p4 = scmp.ne.s32.totalorder %s2284_s15, %s1901_s18  ;;  %p1906_p9 = scmp.lt.u32.totalorder %s2284_s15, %s2337_s6 }
 0x4d4   : > { %p1907_p10 = scmp.lt.u32.totalorder %s1905_s26, %s1901_s18  ;;  %p1909_p12 = scmp.lt.u32.totalorder %s1901_s18, %s2284_s15 }
 0x4d5   : > { %p1903_p7 = pnand %p1902_p4, %p2027_p5 }
 0x4d6   : > { %p1908_p11 = por %p1907_p10, %p1906_p9 }
 0x4d7   : > { %p1904_p8 = pneg %p1903_p7 }
 0x4d8   : > { %p1910_p13 = por %p1909_p12, %p1908_p11 }
 0x4da   : > { %p1911_p0 = pnand %p1910_p13, %p1904_p8 }
 0x4dc   : > { %1914 = shalt.err (!%p1911_p0)
}
 0x4dd   : > { %s1952_s10 = smov 128   ;;  %s1953_s12 = smov 8  }
 0x4de   : > { %1832 = dma.vmem_to_hbm [thread:$0]  (%p2027_p5), %s2286_s9, 512, %s2284_s15, %s2290_s25, %s1952_s10, %s1952_s10, %s1953_s12  }
 0x4df PF: > { %p1838_p1 = scmp.ge.s32.totalorder %s1949_s24, 2  ;;  %s1232_s14 = sand.u32 1, %s1937_s21  }
 0x4e0   : > { %s1233_s13 = scalar_lea.sflag [#allocation3], %s1232_s14 }
 0x4e1   : > { %p1835_p2 = pnand %p1838_p1, %p2031_p6 }
 0x4e3   : > { %1932 = dma.done.wait (!%p1835_p2), %s1233_s13, 512  }
 0x4e4   : > { %1934 = vsyncadd (!%p1835_p2), %s1233_s13, 4294966784  ;;  %p16_p3 = scmp.ge.s32.totalorder %s2014_s27, 4   ;;  %s2340_s21 = smov %s1941_s22 }
 0x4e5   : > { %s2341_s22 = smov %s1945_s23  ;;  %s2342_s23 = smov %s2025_s30 }
 0x4e6   : > { %s2343_s24 = smov %s2014_s27  ;;  %18 = sbr.rel (!%p16_p3) target bundleno = 3 (0x3), region = 79 }
 0x4ed   :  { %1238 = vsyncpa [#allocation3], 1 }
 0x4ee   :  { %1240 = vsyncpa [#allocation3 + $0x1], 1 }

</bundles_post_ra>
